<compile_context>
chip_gen: v7x
topology: tpu7x:2x2x1
jax: 0.10.0
libtpu: 0.0.40
codegen_flags: <defaults>
</compile_context>

<pallas_src>
import functools

import jax
import jax.numpy as jnp
from jax.experimental import pallas as pl
from jax.experimental.pallas import tpu as pltpu


def _round_up(x, m):
    return (x + m - 1) // m * m


# ---------------------------------------------------------------------------
# Fused kernel: conv-as-matmul + BatchNorm (batch stats) + ReLU
# ---------------------------------------------------------------------------
def _conv_bn_relu_kernel(p_ref, w_ref, g_ref, b_ref, o_ref,
                         sum_ref, ssq_ref, scale_ref, shift_ref,
                         *, m_valid, tile_m, eps):
    phase = pl.program_id(0)   # 0: accumulate BN stats, 1: apply BN + ReLU
    i = pl.program_id(1)       # M-tile index

    @pl.when((phase == 0) & (i == 0))
    def _init():
        sum_ref[...] = jnp.zeros_like(sum_ref)
        ssq_ref[...] = jnp.zeros_like(ssq_ref)

    # MXU: (TM, Kp) bf16 x (Kp, OCp) bf16 -> (TM, OCp) f32
    y = jnp.dot(p_ref[...], w_ref[...], preferred_element_type=jnp.float32)

    @pl.when(phase == 0)
    def _stats():
        # Mask rows past the true M (zero-padded patch rows) out of the stats.
        row = i * tile_m + jax.lax.broadcasted_iota(jnp.int32, y.shape, 0)
        yv = jnp.where(row < m_valid, y, 0.0)
        sum_ref[...] += jnp.sum(yv, axis=0, keepdims=True)
        ssq_ref[...] += jnp.sum(yv * yv, axis=0, keepdims=True)

    @pl.when((phase == 1) & (i == 0))
    def _fold_stats():
        inv_m = 1.0 / float(m_valid)
        mean = sum_ref[...] * inv_m
        var = jnp.maximum(ssq_ref[...] * inv_m - mean * mean, 0.0)  # biased var
        scale = g_ref[...] * jax.lax.rsqrt(var + eps)
        scale_ref[...] = scale
        shift_ref[...] = b_ref[...] - mean * scale

    @pl.when(phase == 1)
    def _apply():
        o_ref[...] = jnp.maximum(y * scale_ref[...] + shift_ref[...], 0.0)


# ---------------------------------------------------------------------------
# Wrapper glue (pure XLA data movement): im2col with the per-(n,c) norm scale
# fused into the patch producer, K/OC padding, and the output un-padding.
# ---------------------------------------------------------------------------
def _im2col(x_nchw, KH, KW, stride, padding):
    N, C, H, W = x_nchw.shape
    x_pad = jnp.pad(
        x_nchw, ((0, 0), (0, 0), (padding, padding), (padding, padding)))
    Hout = (H + 2 * padding - KH) // stride + 1
    Wout = (W + 2 * padding - KW) // stride + 1
    slices = []
    for kh in range(KH):
        for kw in range(KW):
            slices.append(
                x_pad[:, :, kh:kh + stride * Hout:stride,
                      kw:kw + stride * Wout:stride])
    # K ordering is (C, KH, KW), matching weight.reshape(OC, C*KH*KW).
    patches = jnp.stack(slices, axis=2)                 # (N, C, KH*KW, Ho, Wo)
    patches = jnp.transpose(patches, (0, 3, 4, 1, 2))   # (N, Ho, Wo, C, KH*KW)
    return patches.reshape(N * Hout * Wout, C * KH * KW), Hout, Wout


def conv_layer_forward(x_nchw, weight, bias, gamma, beta,
                       stride=1, padding=1, tile_m=256):
    """weight: (OC, IC, KH, KW) as in PyTorch Conv2d; returns squeeze(NCHW)."""
    del bias  # exactly cancelled by training-mode BatchNorm mean subtraction
    N, C, H, W = x_nchw.shape
    OC, IC, KH, KW = weight.shape
    assert IC == C

    x = x_nchw.astype(jnp.float32)

    # Step 1, fused: per-(n,c) Frobenius norm over (H, W); the scale multiply
    # is fused by XLA into the im2col producer below (no standalone x_dir
    # round trip through a separate pallas_call).
    norm = jnp.sqrt(jnp.sum(x * x, axis=(-1, -2), keepdims=True))
    x_dir = x * (1.0 / (norm + 1e-4))

    patches, Hout, Wout = _im2col(x_dir, KH, KW, stride, padding)  # (M, K) f32
    M, K = patches.shape

    # Lane-dense padding: K, OC -> multiples of 128; M -> multiple of tile_m.
    Kp = _round_up(K, 128)
    OCp = _round_up(OC, 128)
    TM = min(tile_m, _round_up(M, 8))
    TM = _round_up(TM, 8)
    Mp = _round_up(M, TM)
    n_tiles = Mp // TM

    patches_p = jnp.pad(patches, ((0, Mp - M), (0, Kp - K))).astype(jnp.bfloat16)
    w2d = weight.reshape(OC, K).T                                   # (K, OC)
    w_p = jnp.pad(w2d, ((0, Kp - K), (0, OCp - OC))).astype(jnp.bfloat16)
    g_p = jnp.pad(gamma.astype(jnp.float32).reshape(1, OC), ((0, 0), (0, OCp - OC)))
    b_p = jnp.pad(beta.astype(jnp.float32).reshape(1, OC), ((0, 0), (0, OCp - OC)))

    kernel = functools.partial(_conv_bn_relu_kernel,
                               m_valid=M, tile_m=TM, eps=1e-5)

    # Output index map: during phase 0 every step maps to block 0 and the
    # kernel never writes o_ref, so no HBM writeback happens; phase 1 maps
    # block i -> i and writes each block exactly once.
    out_p = pl.pallas_call(
        kernel,
        out_shape=jax.ShapeDtypeStruct((Mp, OCp), jnp.float32),
        grid_spec=pltpu.PrefetchScalarGridSpec(
            num_scalar_prefetch=0,
            grid=(2, n_tiles),
            in_specs=[
                pl.BlockSpec((TM, Kp), lambda p, i: (i, 0)),    # patches tile
                pl.BlockSpec((Kp, OCp), lambda p, i: (0, 0)),   # weights (resident)
                pl.BlockSpec((1, OCp), lambda p, i: (0, 0)),    # gamma
                pl.BlockSpec((1, OCp), lambda p, i: (0, 0)),    # beta
            ],
            out_specs=pl.BlockSpec((TM, OCp), lambda p, i: (i * p, 0)),
            scratch_shapes=[pltpu.VMEM((1, OCp), jnp.float32)] * 4,
        ),
        compiler_params=pltpu.CompilerParams(
            # M axis carries the shared BN-stat accumulator -> not parallel-safe.
            dimension_semantics=("arbitrary", "arbitrary"),
            # Tiles are sized to fit comfortably (double-buffered) well below
            # this on v5e/v6e and within v7x's 64 MiB physical VMEM.
            vmem_limit_bytes=32 * 1024 * 1024,
        ),
    )(patches_p, w_p, g_p, b_p)

    out = out_p[:M, :OC].reshape(N, Hout, Wout, OC).transpose(0, 3, 1, 2)
    return jnp.squeeze(out)   # torch.squeeze semantics


if __name__ == "__main__":
    key = jax.random.PRNGKey(0)
    k_x, k_w, k_b = jax.random.split(key, 3)

    # Small shapes consistent with the module (CIFAR-like, scaled down).
    N, C, H, W = 2, 4, 16, 16
    OC, KH, KW = 8, 3, 3
    stride, padding = 1, 1

    x = jax.random.normal(k_x, (N, C, H, W), dtype=jnp.float32)
    weight = 0.1 * jax.random.normal(k_w, (OC, C, KH, KW), dtype=jnp.float32)
    bias = 0.1 * jax.random.normal(k_b, (OC,), dtype=jnp.float32)
    gamma = jnp.ones((OC,), dtype=jnp.float32)   # BatchNorm2d default weight
    beta = jnp.zeros((OC,), dtype=jnp.float32)   # BatchNorm2d default bias

    out = conv_layer_forward(x, weight, bias, gamma, beta, stride, padding)
    out = jax.block_until_ready(out)
    assert out.shape == (N, OC, H, W), out.shape

    # Pure-JAX reference (f32) to guard semantics; loose tol for bf16 matmul.
    norm = jnp.sqrt(jnp.sum(x * x, axis=(-1, -2), keepdims=True))
    x_dir = x / (norm + 1e-4)
    y = jax.lax.conv_general_dilated(
        x_dir, weight, (stride, stride), [(padding, padding)] * 2,
        dimension_numbers=("NCHW", "OIHW", "NCHW"))
    y = y + bias.reshape(1, OC, 1, 1)
    mean = jnp.mean(y, axis=(0, 2, 3), keepdims=True)
    var = jnp.mean((y - mean) ** 2, axis=(0, 2, 3), keepdims=True)
    ref = jnp.maximum((y - mean) * jax.lax.rsqrt(var + 1e-5)
                      * gamma.reshape(1, OC, 1, 1) + beta.reshape(1, OC, 1, 1), 0.0)
    ref = jnp.squeeze(ref)
    assert float(jnp.max(jnp.abs(out - ref))) < 0.1

    print("KERNEL_OK")
</pallas_src>

<mosaic_0001>
module attributes {stable_mosaic.version = 11 : i64} {
  func.func @_conv_bn_relu_kernel(%arg0: i32, %arg1: i32, %arg2: memref<256x128xbf16, #tpu.memory_space<vmem>>, %arg3: memref<128x128xbf16, #tpu.memory_space<vmem>>, %arg4: memref<1x128xf32, #tpu.memory_space<vmem>>, %arg5: memref<1x128xf32, #tpu.memory_space<vmem>>, %arg6: memref<256x128xf32, #tpu.memory_space<vmem>>, %arg7: memref<1x128xf32, #tpu.memory_space<vmem>>, %arg8: memref<1x128xf32, #tpu.memory_space<vmem>>, %arg9: memref<1x128xf32, #tpu.memory_space<vmem>>, %arg10: memref<1x128xf32, #tpu.memory_space<vmem>>) attributes {dimension_semantics = [#tpu.dimension_semantics<arbitrary>, #tpu.dimension_semantics<arbitrary>], iteration_bounds = array<i64: 2, 2>, scalar_prefetch = 0 : i64, scratch_operands = 4 : i64, tpu.core_type = #tpu.core_type<tc>, window_params = [{transform_indices = @transform_0, window_bounds = array<i64: 256, 128>}, {pipeline_mode = #tpu.pipeline_mode<synchronous>, transform_indices = @transform_1, window_bounds = array<i64: 128, 128>}, {pipeline_mode = #tpu.pipeline_mode<synchronous>, transform_indices = @transform_2, window_bounds = array<i64: 1, 128>}, {pipeline_mode = #tpu.pipeline_mode<synchronous>, transform_indices = @transform_3, window_bounds = array<i64: 1, 128>}, {transform_indices = @transform_4, window_bounds = array<i64: 256, 128>}]} {
    %c0_i32 = arith.constant 0 : i32
    %0 = arith.cmpi eq, %arg0, %c0_i32 : i32
    %c0_i32_0 = arith.constant 0 : i32
    %1 = arith.cmpi eq, %arg1, %c0_i32_0 : i32
    %2 = arith.andi %0, %1 : i1
    %3 = arith.extui %2 : i1 to i32
    %c0_i32_1 = arith.constant 0 : i32
    %4 = arith.cmpi ne, %3, %c0_i32_1 : i32
    scf.if %4 {
      %cst_11 = arith.constant 0.000000e+00 : f32
      %19 = vector.broadcast %cst_11 : f32 to vector<1x128xf32>
      %c0_12 = arith.constant 0 : index
      %c0_13 = arith.constant 0 : index
      %20 = vector.load %arg7[%c0_12, %c0_13] : memref<1x128xf32, #tpu.memory_space<vmem>>, vector<1x128xf32>
      tpu.vector_store %arg7[%c0_12, %c0_13], %19 {strides = array<i32>} : memref<1x128xf32, #tpu.memory_space<vmem>>, vector<1x128xf32>,
      %cst_14 = arith.constant 0.000000e+00 : f32
      %21 = vector.broadcast %cst_14 : f32 to vector<1x128xf32>
      %c0_15 = arith.constant 0 : index
      %c0_16 = arith.constant 0 : index
      %22 = vector.load %arg8[%c0_15, %c0_16] : memref<1x128xf32, #tpu.memory_space<vmem>>, vector<1x128xf32>
      tpu.vector_store %arg8[%c0_15, %c0_16], %21 {strides = array<i32>} : memref<1x128xf32, #tpu.memory_space<vmem>>, vector<1x128xf32>,
    } else {
    }
    %c0 = arith.constant 0 : index
    %c0_2 = arith.constant 0 : index
    %5 = vector.load %arg2[%c0, %c0_2] : memref<256x128xbf16, #tpu.memory_space<vmem>>, vector<256x128xbf16>
    %c0_3 = arith.constant 0 : index
    %c0_4 = arith.constant 0 : index
    %6 = vector.load %arg3[%c0_3, %c0_4] : memref<128x128xbf16, #tpu.memory_space<vmem>>, vector<128x128xbf16>
    %cst = arith.constant dense<0.000000e+00> : vector<256x128xf32>
    %7 = tpu.matmul %5, %6, %cst {dimension_numbers = #tpu.dot_dimension_numbers<[1], [0], [0], [1], [0, 0, 1, 1], [], []>} : vector<256x128xbf16>, vector<128x128xbf16>, vector<256x128xf32> -> vector<256x128xf32>
    %c0_i32_5 = arith.constant 0 : i32
    %8 = arith.cmpi eq, %arg0, %c0_i32_5 : i32
    %9 = arith.extui %8 : i1 to i32
    %c0_i32_6 = arith.constant 0 : i32
    %10 = arith.cmpi ne, %9, %c0_i32_6 : i32
    scf.if %10 {
      %c256_i32 = arith.constant 256 : i32
      %19 = arith.muli %arg1, %c256_i32 : i32
      %20 = tpu.iota {dimensions = array<i32: 0>} : vector<256x128xi32>
      %21 = vector.broadcast %19 : i32 to vector<256x128xi32>
      %22 = arith.addi %21, %20 : vector<256x128xi32>
      %c512_i32 = arith.constant 512 : i32
      %23 = vector.broadcast %c512_i32 : i32 to vector<256x128xi32>
      %24 = arith.cmpi slt, %22, %23 : vector<256x128xi32>
      %cst_11 = arith.constant 0.000000e+00 : f32
      %25 = vector.broadcast %cst_11 : f32 to vector<256x128xf32>
      %26 = arith.select %24, %7, %25 : vector<256x128xi1>, vector<256x128xf32>
      %c0_12 = arith.constant 0 : index
      %c0_13 = arith.constant 0 : index
      %27 = vector.load %arg7[%c0_12, %c0_13] : memref<1x128xf32, #tpu.memory_space<vmem>>, vector<1x128xf32>
      %cst_14 = arith.constant dense<0.000000e+00> : vector<128xf32>
      %28 = vector.multi_reduction <add>, %26, %cst_14 [0] : vector<256x128xf32> to vector<128xf32>
      %29 = vector.shape_cast %28 : vector<128xf32> to vector<1x128xf32>
      %30 = arith.addf %27, %29 : vector<1x128xf32>
      %c0_15 = arith.constant 0 : index
      %c0_16 = arith.constant 0 : index
      %31 = vector.load %arg7[%c0_15, %c0_16] : memref<1x128xf32, #tpu.memory_space<vmem>>, vector<1x128xf32>
      tpu.vector_store %arg7[%c0_15, %c0_16], %30 {strides = array<i32>} : memref<1x128xf32, #tpu.memory_space<vmem>>, vector<1x128xf32>,
      %c0_17 = arith.constant 0 : index
      %c0_18 = arith.constant 0 : index
      %32 = vector.load %arg8[%c0_17, %c0_18] : memref<1x128xf32, #tpu.memory_space<vmem>>, vector<1x128xf32>
      %33 = arith.mulf %26, %26 : vector<256x128xf32>
      %cst_19 = arith.constant dense<0.000000e+00> : vector<128xf32>
      %34 = vector.multi_reduction <add>, %33, %cst_19 [0] : vector<256x128xf32> to vector<128xf32>
      %35 = vector.shape_cast %34 : vector<128xf32> to vector<1x128xf32>
      %36 = arith.addf %32, %35 : vector<1x128xf32>
      %c0_20 = arith.constant 0 : index
      %c0_21 = arith.constant 0 : index
      %37 = vector.load %arg8[%c0_20, %c0_21] : memref<1x128xf32, #tpu.memory_space<vmem>>, vector<1x128xf32>
      tpu.vector_store %arg8[%c0_20, %c0_21], %36 {strides = array<i32>} : memref<1x128xf32, #tpu.memory_space<vmem>>, vector<1x128xf32>,
    } else {
    }
    %c1_i32 = arith.constant 1 : i32
    %11 = arith.cmpi eq, %arg0, %c1_i32 : i32
    %c0_i32_7 = arith.constant 0 : i32
    %12 = arith.cmpi eq, %arg1, %c0_i32_7 : i32
    %13 = arith.andi %11, %12 : i1
    %14 = arith.extui %13 : i1 to i32
    %c0_i32_8 = arith.constant 0 : i32
    %15 = arith.cmpi ne, %14, %c0_i32_8 : i32
    scf.if %15 {
      %c0_11 = arith.constant 0 : index
      %c0_12 = arith.constant 0 : index
      %19 = vector.load %arg7[%c0_11, %c0_12] : memref<1x128xf32, #tpu.memory_space<vmem>>, vector<1x128xf32>
      %cst_13 = arith.constant 0.001953125 : f32
      %20 = vector.broadcast %cst_13 : f32 to vector<1x128xf32>
      %21 = arith.mulf %19, %20 : vector<1x128xf32>
      %c0_14 = arith.constant 0 : index
      %c0_15 = arith.constant 0 : index
      %22 = vector.load %arg8[%c0_14, %c0_15] : memref<1x128xf32, #tpu.memory_space<vmem>>, vector<1x128xf32>
      %cst_16 = arith.constant 0.001953125 : f32
      %23 = vector.broadcast %cst_16 : f32 to vector<1x128xf32>
      %24 = arith.mulf %22, %23 : vector<1x128xf32>
      %25 = arith.mulf %21, %21 : vector<1x128xf32>
      %26 = arith.subf %24, %25 : vector<1x128xf32>
      %cst_17 = arith.constant 0.000000e+00 : f32
      %27 = vector.broadcast %cst_17 : f32 to vector<1x128xf32>
      %28 = arith.maximumf %26, %27 : vector<1x128xf32>
      %c0_18 = arith.constant 0 : index
      %c0_19 = arith.constant 0 : index
      %29 = vector.load %arg4[%c0_18, %c0_19] : memref<1x128xf32, #tpu.memory_space<vmem>>, vector<1x128xf32>
      %cst_20 = arith.constant 9.99999974E-6 : f32
      %30 = vector.broadcast %cst_20 : f32 to vector<1x128xf32>
      %31 = arith.addf %28, %30 : vector<1x128xf32>
      %32 = math.rsqrt %31 : vector<1x128xf32>
      %33 = arith.mulf %29, %32 : vector<1x128xf32>
      %c0_21 = arith.constant 0 : index
      %c0_22 = arith.constant 0 : index
      %34 = vector.load %arg9[%c0_21, %c0_22] : memref<1x128xf32, #tpu.memory_space<vmem>>, vector<1x128xf32>
      tpu.vector_store %arg9[%c0_21, %c0_22], %33 {strides = array<i32>} : memref<1x128xf32, #tpu.memory_space<vmem>>, vector<1x128xf32>,
      %c0_23 = arith.constant 0 : index
      %c0_24 = arith.constant 0 : index
      %35 = vector.load %arg5[%c0_23, %c0_24] : memref<1x128xf32, #tpu.memory_space<vmem>>, vector<1x128xf32>
      %36 = arith.mulf %21, %33 : vector<1x128xf32>
      %37 = arith.subf %35, %36 : vector<1x128xf32>
      %c0_25 = arith.constant 0 : index
      %c0_26 = arith.constant 0 : index
      %38 = vector.load %arg10[%c0_25, %c0_26] : memref<1x128xf32, #tpu.memory_space<vmem>>, vector<1x128xf32>
      tpu.vector_store %arg10[%c0_25, %c0_26], %37 {strides = array<i32>} : memref<1x128xf32, #tpu.memory_space<vmem>>, vector<1x128xf32>,
    } else {
    }
    %c1_i32_9 = arith.constant 1 : i32
    %16 = arith.cmpi eq, %arg0, %c1_i32_9 : i32
    %17 = arith.extui %16 : i1 to i32
    %c0_i32_10 = arith.constant 0 : i32
    %18 = arith.cmpi ne, %17, %c0_i32_10 : i32
    scf.if %18 {
      %c0_11 = arith.constant 0 : index
      %c0_12 = arith.constant 0 : index
      %19 = vector.load %arg9[%c0_11, %c0_12] : memref<1x128xf32, #tpu.memory_space<vmem>>, vector<1x128xf32>
      %20 = vector.broadcast %19 : vector<1x128xf32> to vector<256x128xf32>
      %21 = arith.mulf %7, %20 : vector<256x128xf32>
      %c0_13 = arith.constant 0 : index
      %c0_14 = arith.constant 0 : index
      %22 = vector.load %arg10[%c0_13, %c0_14] : memref<1x128xf32, #tpu.memory_space<vmem>>, vector<1x128xf32>
      %23 = vector.broadcast %22 : vector<1x128xf32> to vector<256x128xf32>
      %24 = arith.addf %21, %23 : vector<256x128xf32>
      %cst_15 = arith.constant 0.000000e+00 : f32
      %25 = vector.broadcast %cst_15 : f32 to vector<256x128xf32>
      %26 = arith.maximumf %24, %25 : vector<256x128xf32>
      %c0_16 = arith.constant 0 : index
      %c0_17 = arith.constant 0 : index
      %27 = vector.load %arg6[%c0_16, %c0_17] : memref<256x128xf32, #tpu.memory_space<vmem>>, vector<256x128xf32>
      tpu.vector_store %arg6[%c0_16, %c0_17], %26 {strides = array<i32>} : memref<256x128xf32, #tpu.memory_space<vmem>>, vector<256x128xf32>,
    } else {
    }
    return
  }
  func.func @transform_0(%arg0: i32, %arg1: i32) -> (i32, i32) {
    %c0_i32 = arith.constant 0 : i32
    %c0_i32_0 = arith.constant 0 : i32
    return %arg1, %c0_i32 : i32, i32
  }
  func.func @transform_1(%arg0: i32, %arg1: i32) -> (i32, i32) {
    %c0_i32 = arith.constant 0 : i32
    %c0_i32_0 = arith.constant 0 : i32
    %c0_i32_1 = arith.constant 0 : i32
    return %c0_i32, %c0_i32_0 : i32, i32
  }
  func.func @transform_2(%arg0: i32, %arg1: i32) -> (i32, i32) {
    %c0_i32 = arith.constant 0 : i32
    %c0_i32_0 = arith.constant 0 : i32
    %c0_i32_1 = arith.constant 0 : i32
    return %c0_i32, %c0_i32_0 : i32, i32
  }
  func.func @transform_3(%arg0: i32, %arg1: i32) -> (i32, i32) {
    %c0_i32 = arith.constant 0 : i32
    %c0_i32_0 = arith.constant 0 : i32
    %c0_i32_1 = arith.constant 0 : i32
    return %c0_i32, %c0_i32_0 : i32, i32
  }
  func.func @transform_4(%arg0: i32, %arg1: i32) -> (i32, i32) {
    %0 = arith.muli %arg1, %arg0 : i32
    %c0_i32 = arith.constant 0 : i32
    %c0_i32_0 = arith.constant 0 : i32
    return %0, %c0_i32 : i32, i32
  }
}

</mosaic_0001>

<bundles_post_ra>
// kernel: tpu_custom_call.1
= control target key start
LH: loop header
LB: loop body
LE: loop exit
PB: predicated region body
PF: predicated region fallthrough
CT: control target
= control target key end

     0   :  { %s2237_s0 = inlined_call_operand.hbm [shape: bf16[512,128], index: 0, kind: input, shape index: {}]   ;;  %s2238_s1 = inlined_call_operand.hbm [shape: bf16[128,128], index: 1, kind: input, shape index: {}]   ;;  %s2239_s2 = inlined_call_operand.vmem [shape: f32[1,128], index: 2, kind: input, shape index: {}]   ;;  %s2240_s3 = inlined_call_operand.vmem [shape: f32[1,128], index: 3, kind: input, shape index: {}]   ;;  %s2241_s4 = inlined_call_operand.hbm [shape: f32[512,128], index: 4, kind: output, shape index: {}]  }
   0x1   :  { %2255 = sst [smem:[#allocation20_spill]] %s2238_s1 }
   0x2   :  { %2256 = sst [smem:[#allocation21_spill]] %s2241_s4 }
   0x3   :  { %9 = vsyncpa [#allocation7], 0 }
   0x4   :  { %11 = vsyncpa [#allocation7 + $0x1], 0 }
   0x5   :  { %12 = vsyncpa [#allocation10], 0 }
   0x6   :  { %13 = vsyncpa [#allocation8], 0 }
   0x7   :  { %15 = vsyncpa [#allocation8 + $0x1], 0  ;;  %s1630_s15 = smov 0   ;;  %s1632_s16 = smov 0  }
   0x8   :  { %s1634_s17 = smov 0   ;;  %s1636_s18 = smov 0  }
   0x9   :  { %s1638_s19 = smov 0   ;;  %s1640_s20 = smov 0  }
   0xa   :  { %s1642_s21 = smov 0   ;;  %s1644_s22 = smov 0  }
   0xb   :  { %s1646_s23 = smov 0   ;;  %s1648_s24 = smov 0  }
   0xc   :  { %s1650_s25 = smov 0  }
   0xd LB: > { %2257 = sst [smem:[#allocation15_spill]] %s1555_s15  ;;  %s1131_s26 = sadd.s32 4294967295, %s1595_s25   ;;  %s1595_s25 = sphi %s1650_s25, %s21_s25   ;;  %s1591_s24 = sphi %s1648_s24, %s2293_s24   ;;  %s1587_s23 = sphi %s1646_s23, %s2292_s23   ;;  %s1583_s22 = sphi %s1644_s22, %s2282_s22   ;;  %s1579_s21 = sphi %s1642_s21, %s2291_s21   ;;  %s1575_s20 = sphi %s1640_s20, %s2290_s20   ;;  %s1571_s19 = sphi %s1638_s19, %s2289_s19   ;;  %s1567_s18 = sphi %s1636_s18, %s2288_s18   ;;  %s1563_s17 = sphi %s1634_s17, %s2287_s17   ;;  %s1559_s16 = sphi %s1632_s16, %s2286_s16   ;;  %s1555_s15 = sphi %s1630_s15, %s2285_s15  }
   0xe   : > { %2258 = sst [smem:[#allocation16_spill]] %s1591_s24  ;;  %s1132_s27 = sadd.s32 4294967294, %s1595_s25  }
   0xf   : > { %p53_p0 = scmp.ne.s32.totalorder %s1571_s19, %s1567_s18  ;;  %p1686_p1 = scmp.eq.s32.totalorder %s1131_s26, 0 }
  0x10   : > { %p141_p2 = scmp.ne.s32.totalorder %s1563_s17, %s1559_s16  ;;  %p142_p4 = scmp.eq.s32.totalorder %s1131_s26, 3 }
  0x11   : > { %s2259_s28 = scalar_select %p1686_p1, 1, 0 }
  0x12   : > { %p1695_p3 = por %p1686_p1, %p53_p0  ;;  %p147_p5 = scmp.ne.s32.totalorder %s1559_s16, %s1555_s15 }
  0x13   : > { %p148_p6 = scmp.eq.s32.totalorder %s1132_s27, 3  ;;  %p1701_p7 = por %p142_p4, %p141_p2 }
  0x14   : > { %s2260_s30 = scalar_select %p1695_p3, 1, 0 }
  0x15   : > { %s2261_s5 = scalar_select %p1701_p7, 1, 0 }
  0x16   : > { %p1133_p8 = scmp.ge.s32.totalorder %s1595_s25, 1  ;;  %p1706_p9 = por %p148_p6, %p147_p5 }
  0x17   : > { %p155_p10 = scmp.lt.s32.totalorder %s1595_s25, 5  ;;  %s1597_s8 = smov [#allocation9]  }
  0x18   : > { %s2262_s6 = scalar_select %p1706_p9, 1, 0 }
  0x19   : > { %p1711_p11 = pnand %p1133_p8, %p155_p10  ;;  %s167_s9 = sshll.u32 %s1597_s8, 4  ;;  %s168_s9 = int_to_ptr.vmem [resolvable:$true] %s167_s9 }
  0x1a   : > { %2263 = sst [smem:[#allocation17_spill]] %s2262_s6  ;;  %s2266_s1 = sld [smem:[#allocation20_spill]] }
  0x1b   : > { %s2264_s7 = scalar_select %p1711_p11, 1, 0 }
  0x1c   : > { %p1275_p12 = pneg %p1711_p11 }
  0x1e   : > { %p1719_p13 = pnand %p1275_p12, %p1686_p1 }
  0x20   : > { %s1411_s13 = scalar_lea.hbm %s2266_s1, 1024  ;;  %p1413_p2 = pneg %p1719_p13 }
  0x21   : > { %p1412_p0 = scmp.ne.s32.totalorder %s2266_s1, %s1411_s13  ;;  %p1418_p6 = scmp.lt.u32.totalorder %s1411_s13, %s2266_s1 }
  0x23   : > { %p1414_p4 = pnand %p1413_p2, %p1412_p0 }
  0x25   : > { %p1415_p5 = pneg %p1414_p4 }
  0x27   : > { %p1420_p8 = pnand %p1418_p6, %p1415_p5 }
  0x29   : > { %1423 = shalt.err (!%p1420_p8)
}
  0x2a   : > { %s1424_s8 = scalar_lea.vmem %s168_s9, 1024  ;;  %p1432_p7 = scmp.lt.s32.totalorder %s168_s9, %s168_s9 }
  0x2b   : > { %p1425_p10 = scmp.ne.s32.totalorder %s168_s9, %s1424_s8  ;;  %p1433_p1 = scmp.lt.s32.totalorder %s1424_s8, %s1424_s8 }
  0x2d   : > { %p1427_p12 = pnand %p1425_p10, %p1413_p2  ;;  %p1434_p3 = por %p1433_p1, %p1432_p7 }
  0x2f   : > { %p1428_p9 = pneg %p1427_p12 }
  0x31   : > { %p1435_p11 = pnand %p1434_p3, %p1428_p9 }
  0x33   : > { %1438 = shalt.err (!%p1435_p11)
}
  0x34   : > { %s2247_s11 = smov 64   ;;  %s2248_s12 = smov 4  }
  0x35   : > { %1278 = dma.hbm_to_vmem [thread:$0]  (!%p1719_p13), %s2266_s1, 1024, %s168_s9, [#allocation10], %s2247_s11, %s2247_s11, %s2248_s12  }
  0x36   : > { %s30_s18 = sadd.s32 1, %s1587_s23  ;;  %s33_s26 = sadd.s32 1, %s1591_s24 }
  0x37   : > { %p31_p1 = scmp.ge.s32.totalorder %s30_s18, 2  ;;  %s40_s27 = sadd.s32 1, %s1575_s20 }
  0x38   : > { %p47_p3 = scmp.ne.s32.totalorder %s1575_s20, %s1571_s19  ;;  %p48_p7 = scmp.eq.s32.totalorder %s1595_s25, 0 }
  0x39   : > { %s2295_s18 = smov (%p31_p1, %s30_s18), 0  ;;  %s2297_s26 = smov (!%p31_p1, %s33_s26), %s1591_s24 }
  0x3a   : > { %2267 = sst [smem:[#allocation18_spill]] %s2295_s18  ;;  %s37_s10 = ssub.s32 %s1587_s23, %s2295_s18 }
  0x3b   : > { %p35_p9 = scmp.ge.s32.totalorder %s2297_s26, 2  ;;  %p38_p11 = scmp.eq.s32.totalorder %s37_s10, 0 }
  0x3c   : > { %p1753_p13 = por %p48_p7, %p47_p3  ;;  %s126_s8 = smul.u32 %s1587_s23, %s1591_s24 }
  0x3d   : > { %s2299_s26 = smov (%p35_p9, %s2297_s26), 0  ;;  %p1288_p0 = scmp.lt.s32.totalorder %s1595_s25, 4 }
  0x3e   : > { %2269 = sst [smem:[#allocation19_spill]] %s2299_s26  ;;  %s127_s14 = smul.u32 %s2299_s26, %s2295_s18 }
  0x3f   : > { %s1762_s13 = scalar_select %p38_p11, %s1575_s20, %s40_s27  }
  0x40   : > { %s187_s11 = sand.u32 1, %s1575_s20   ;;  %s1177_s12 = sshll.u32 %s1587_s23, 11 }
  0x41   : > { %s128_s29 = ssub.s32 %s126_s8, %s127_s14  ;;  %s1136_s1 = sshll.u32 %s187_s11, 7 }
  0x42   : > { %p129_p2 = scmp.eq.s32.totalorder %s128_s29, 0  ;;  %s1772_s15 = scalar_lea.hbm %s2237_s0, %s1177_s12 }
  0x43   : > { %s2270_s4 = sadd.s32 1, %s1563_s17  ;;  %s191_s27 = scalar_lea.vmem [#allocation6], %s1136_s1 }
  0x44   : > { %s1777_s24 = scalar_select %p129_p2, %s1563_s17, %s2270_s4  }
  0x45   : > { %s198_s26 = sshll.u32 %s191_s27, 4  ;;  %p1781_p4 = pnand %p1288_p0, %p1753_p13  ;;  %s1785_s26 = int_to_ptr.vmem [resolvable:$true] %s198_s26 }
  0x46   : > { %s1787_s29 = scalar_lea.sflag [#allocation7], %s187_s11  ;;  %s1439_s6 = scalar_lea.hbm %s1772_s15, 2048 }
  0x47   : > { %p1440_p5 = scmp.ne.s32.totalorder %s1772_s15, %s1439_s6  ;;  %p1441_p6 = pneg %p1781_p4 }
  0x48   : > { %s1444_s12 = scalar_lea.hbm %s2237_s0, 4096  ;;  %p1445_p12 = scmp.lt.u32.totalorder %s1772_s15, %s2237_s0 }
  0x49   : > { %p1442_p8 = pnand %p1441_p6, %p1440_p5  ;;  %p1446_p1 = scmp.lt.u32.totalorder %s1444_s12, %s1439_s6 }
  0x4a   : > { %p1448_p7 = scmp.lt.u32.totalorder %s1439_s6, %s1772_s15 }
  0x4b   : > { %p1443_p10 = pneg %p1442_p8  ;;  %p1447_p3 = por %p1446_p1, %p1445_p12 }
  0x4d   : > { %p1449_p9 = por %p1448_p7, %p1447_p3 }
  0x4f   : > { %p1450_p11 = pnand %p1449_p9, %p1443_p10 }
  0x51   : > { %1453 = shalt.err (!%p1450_p11)
}
  0x52   : > { %s1454_s11 = scalar_lea.vmem %s1785_s26, 2048  ;;  %s1600_s14 = smov [#allocation6]  }
  0x53   : > { %p1455_p13 = scmp.ne.s32.totalorder %s1785_s26, %s1454_s11  ;;  %s1459_s10 = sshll.u32 %s1600_s14, 4  ;;  %s1460_s10 = int_to_ptr.vmem [resolvable:$false] %s1459_s10 }
  0x54   : > { %s1461_s27 = scalar_lea.vmem %s1460_s10, 4096  ;;  %p1462_p5 = scmp.lt.s32.totalorder %s1785_s26, %s1460_s10 }
  0x55   : > { %p1457_p0 = pnand %p1455_p13, %p1441_p6  ;;  %p1463_p8 = scmp.lt.s32.totalorder %s1461_s27, %s1454_s11 }
  0x57   : > { %p1458_p2 = pneg %p1457_p0  ;;  %p1464_p12 = por %p1463_p8, %p1462_p5 }
  0x59   : > { %p1465_p1 = pnand %p1464_p12, %p1458_p2 }
  0x5b   : > { %1468 = shalt.err (!%p1465_p1)
}
  0x5c   : > { %s2272_s6 = smov 4   ;;  %s2273_s1 = smov 64  }
  0x5d   : > { %1282 = dma.hbm_to_vmem [thread:$0]  (!%p1781_p4), %s1772_s15, 2048, %s1785_s26, %s1787_s29, %s2273_s1, %s2273_s1, %s2272_s6  }
  0x5e   : > { %p2274_p6 = scmp.ne.s32.totalorder %s2264_s7, 0 }
  0x5f   : > { %s212_s4 = sand.u32 (!%p2274_p6), 1, %s1571_s19   ;;  %p2275_p10 = scmp.ne.s32.totalorder (!%p2274_p6), %s2260_s30, 0 }
  0x60   : > { %210 = sbr.rel (%p2274_p6) target bundleno = 542 (0x21e), region = 36  ;;  %s1140_s12 = sshll.u32 (!%p2274_p6), %s212_s4, 7 }
  0x61   : > { %s213_s9 = scalar_lea.sflag (!%p2274_p6), [#allocation7], %s212_s4  ;;  %s1821_s8 = scalar_lea.vmem (!%p2274_p6), [#allocation6], %s1140_s12 }
  0x67   : > { %1542 = dma.done.wait (%p2275_p10), %s213_s9, 2048  }
  0x68   : > { %1544 = vsyncadd (%p2275_p10), %s213_s9, 4294965248  ;;  %p2276_p3 = scmp.ne.s32.totalorder %s2259_s28, 0 }
  0x6a   : > { %1546 = dma.done.wait (%p2276_p3), [#allocation10], 1024  }
  0x6b   : > { %1548 = vsyncadd (%p2276_p3), [#allocation10], 4294966272  ;;  %s242_s15 = sand.u32 1, %s1559_s16   ;;  %p249_p4 = scmp.eq.s32.totalorder %s1583_s22, 0 }
  0x6c   : > { %s1142_s7 = sshll.u32 %s242_s15, 8  ;;  %p250_p7 = scmp.eq.s32.totalorder %s1579_s21, 0 }
  0x6d   : > { %s1838_s30 = scalar_lea.vmem [#allocation11], %s1142_s7 }
  0x6e   : > { %p251_p9 = pnand %p250_p7, %p249_p4 }
  0x6f   : > { %v1601_v0 = vmov (!%p251_p9), 0.0  }
  0x70   : > { %254 = sbr.rel (%p251_p9) target bundleno = 119 (0x77), region = 48  ;;  %255 = vst [vmem:[#allocation2] sm:$0x1] (!%p251_p9), %v1601_v0  ;;  %256 = vst [vmem:[#allocation3] sm:$0x1] (!%p251_p9), %v1601_v0 }
  0x77 PF: > { %v1385_v1 = vld [vmem:[#allocation9] sm:$0xff]   ;;  %v1386_v2 = vld [vmem:[#allocation9 + $0x8] sm:$0xff]   ;;  %v1387_v3 = vld [vmem:[#allocation9 + $0x10] sm:$0xff]   ;;  %p1167_p11 = scmp.ne.s32.totalorder %s1583_s22, 0 }
  0x78   : > { %1203 = vmatprep.subr.bf16.mxu0 %v1385_v1  ;;  %1251 = vmatprep.subr.bf16.mxu1 %v1385_v1  ;;  %v1388_v4 = vld [vmem:[#allocation9 + $0x18] sm:$0xff]   ;;  %v1393_v5 = vld [vmem:[%s1821_s8] sm:$0xff]   ;;  %v1390_v8 = vld [vmem:[#allocation9 + $0x28] sm:$0xff]   ;;  %v614_v57 = vlaneseq (!%p1167_p11)  ;;  %s1168_s28 = sshll.u32 (!%p1167_p11), %s1579_s21, 8 }
  0x79   : > { %1204 = vmatpush3.bf16.msra.mxu0 %v1385_v1  ;;  %1259 = vmatpush3.bf16.msra.mxu1 %v1385_v1  ;;  %v1394_v6 = vld [vmem:[%s1821_s8 + $0x40] sm:$0xff]   ;;  %v1391_v9 = vld [vmem:[#allocation9 + $0x30] sm:$0xff]   ;;  %v1392_v10 = vld [vmem:[#allocation9 + $0x38] sm:$0xff]   ;;  %v1925_v60 = vstv (!%p1167_p11), %s1168_s28 }
  0x7a   : > { %1205 = vmatprep.subr.bf16.mxu0 %v1386_v2  ;;  %1252 = vmatprep.subr.bf16.mxu1 %v1386_v2  ;;  %v1389_v7 = vld [vmem:[#allocation9 + $0x20] sm:$0xff]   ;;  %v1395_v11 = vld [vmem:[%s1821_s8 + $0x8] sm:$0xff]   ;;  %v1397_v13 = vld [vmem:[%s1821_s8 + $0x10] sm:$0xff]   ;;  %v1921_v58 = vshrl.u32 (!%p1167_p11), %v614_v57, 7 }
  0x7b   : > { %1219 = vmatprep.mubr.bf16.mxu0 %v1393_v5  ;;  %1235 = vmatprep.mubr.bf16.mxu1 %v1394_v6  ;;  %v1396_v12 = vld [vmem:[%s1821_s8 + $0x48] sm:$0xff]   ;;  %v1398_v14 = vld [vmem:[%s1821_s8 + $0x50] sm:$0xff]   ;;  %v1399_v15 = vld [vmem:[%s1821_s8 + $0x18] sm:$0xff]  }
  0x7c   : > { %v1400_v16 = vld [vmem:[%s1821_s8 + $0x58] sm:$0xff]   ;;  %v1401_v17 = vld [vmem:[%s1821_s8 + $0x20] sm:$0xff]   ;;  %v1403_v19 = vld [vmem:[%s1821_s8 + $0x28] sm:$0xff]   ;;  %v616_v59 = vadd.s32 (!%p1167_p11), 8, %v1921_v58  ;;  %v617_v61 = vadd.s32 (!%p1167_p11), 16, %v1921_v58  ;;  %v618_v62 = vadd.s32 (!%p1167_p11), 24, %v1921_v58  ;;  %v648_v63 = vadd.s32 (!%p1167_p11), %v1925_v60, %v1921_v58 }
  0x7d   : > { %1206 = vmatpush3.bf16.msra.mxu0 %v1386_v2  ;;  %1260 = vmatpush3.bf16.msra.mxu1 %v1386_v2  ;;  %v1402_v18 = vld [vmem:[%s1821_s8 + $0x60] sm:$0xff]   ;;  %v1404_v20 = vld [vmem:[%s1821_s8 + $0x68] sm:$0xff]   ;;  %v1405_v21 = vld [vmem:[%s1821_s8 + $0x30] sm:$0xff]   ;;  %v619_v1 = vadd.s32 (!%p1167_p11), 32, %v1921_v58  ;;  %v621_v5 = vadd.s32 (!%p1167_p11), 48, %v1921_v58 }
  0x7e   : > { %1207 = vmatprep.subr.bf16.mxu0 %v1387_v3  ;;  %1253 = vmatprep.subr.bf16.mxu1 %v1387_v3  ;;  %v1406_v22 = vld [vmem:[%s1821_s8 + $0x70] sm:$0xff]   ;;  %v1407_v23 = vld [vmem:[%s1821_s8 + $0x38] sm:$0xff]   ;;  %v649_v0 = vadd.s32 (!%p1167_p11), %v1925_v60, %v616_v59  ;;  %v650_v2 = vadd.s32 (!%p1167_p11), %v1925_v60, %v617_v61  ;;  %vm680_vm0 = vcmp.lt.s32.totalorder (!%p1167_p11), %v648_v63, 512  ;;  %v626_v59 = vadd.s32 (!%p1167_p11), 88, %v1921_v58 }
  0x7f   : > { %v1408_v24 = vld [vmem:[%s1821_s8 + $0x78] sm:$0xff]   ;;  %v652_v6 = vadd.s32 (!%p1167_p11), %v1925_v60, %v619_v1  ;;  %v627_v1 = vadd.s32 (!%p1167_p11), 96, %v1921_v58 }
  0x80   : > { %vm681_vm1 = vcmp.lt.s32.totalorder (!%p1167_p11), %v649_v0, 512  ;;  %vm682_vm2 = vcmp.lt.s32.totalorder (!%p1167_p11), %v650_v2, 512 }
  0x81   : > { %1208 = vmatpush3.bf16.msra.mxu0 %v1387_v3  ;;  %1261 = vmatpush3.bf16.msra.mxu1 %v1387_v3  ;;  %v620_v3 = vadd.s32 (!%p1167_p11), 40, %v1921_v58  ;;  %vm684_vm4 = vcmp.lt.s32.totalorder (!%p1167_p11), %v652_v6, 512 }
  0x82   : > { %1209 = vmatprep.subr.bf16.mxu0 %v1388_v4  ;;  %1254 = vmatprep.subr.bf16.mxu1 %v1388_v4 }
  0x85   : > { %1210 = vmatpush3.bf16.msra.mxu0 %v1388_v4  ;;  %1262 = vmatpush3.bf16.msra.mxu1 %v1388_v4  ;;  %v651_v4 = vadd.s32 (!%p1167_p11), %v1925_v60, %v618_v62 }
  0x86   : > { %1211 = vmatprep.subr.bf16.mxu0 %v1389_v7  ;;  %1255 = vmatprep.subr.bf16.mxu1 %v1389_v7 }
  0x87   : > { %vm683_vm3 = vcmp.lt.s32.totalorder (!%p1167_p11), %v651_v4, 512 }
  0x89   : > { %1212 = vmatpush3.bf16.msra.mxu0 %v1389_v7  ;;  %1263 = vmatpush3.bf16.msra.mxu1 %v1389_v7 }
  0x8a   : > { %1213 = vmatprep.subr.bf16.mxu0 %v1390_v8  ;;  %1256 = vmatprep.subr.bf16.mxu1 %v1390_v8 }
  0x8d   : > { %1214 = vmatpush3.bf16.msra.mxu0 %v1390_v8  ;;  %1264 = vmatpush3.bf16.msra.mxu1 %v1390_v8 }
  0x8e   : > { %1215 = vmatprep.subr.bf16.mxu0 %v1391_v9  ;;  %1257 = vmatprep.subr.bf16.mxu1 %v1391_v9 }
  0x91   : > { %1216 = vmatpush3.bf16.msra.mxu0 %v1391_v9  ;;  %1265 = vmatpush3.bf16.msra.mxu1 %v1391_v9  ;;  %v622_v9 = vadd.s32 (!%p1167_p11), 56, %v1921_v58 }
  0x92   : > { %1217 = vmatprep.subr.bf16.mxu0 %v1392_v10  ;;  %1258 = vmatprep.subr.bf16.mxu1 %v1392_v10 }
  0x95   : > { %1218 = vmatpush3.bf16.msra.mxu0 %v1392_v10  ;;  %1266 = vmatpush3.bf16.msra.mxu1 %v1392_v10  ;;  %v653_v10 = vadd.s32 (!%p1167_p11), %v1925_v60, %v620_v3 }
  0x97   : > { %vm685_vm5 = vcmp.lt.s32.totalorder (!%p1167_p11), %v653_v10, 512 }
  0x98   : > { %1220 = vmatmul.mubr.bf16.vlgmr.msra.gmra.mrb[0].mxu0 %v1395_v11  ;;  %1236 = vmatmul.mubr.bf16.vlgmr.msra.gmra.mrb[0].mxu1 %v1396_v12  ;;  %v623_v12 = vadd.s32 (!%p1167_p11), 64, %v1921_v58 }
  0x99   : > { %1223 = vmatprep.mubr.bf16.mxu0 %v1397_v13  ;;  %1239 = vmatprep.mubr.bf16.mxu1 %v1398_v14  ;;  %v654_v14 = vadd.s32 (!%p1167_p11), %v1925_v60, %v621_v5 }
  0x9b   : > { %vm686_vm6 = vcmp.lt.s32.totalorder (!%p1167_p11), %v654_v14, 512  ;;  %v660_v14 = vadd.s32 (!%p1167_p11), %v1925_v60, %v627_v1  ;;  %v632_v1 = vadd.s32 (!%p1167_p11), 136, %v1921_v58 }
  0x9d   : > { %vm692_vm12 = vcmp.lt.s32.totalorder (!%p1167_p11), %v660_v14, 512  ;;  %v665_v14 = vadd.s32 (!%p1167_p11), %v1925_v60, %v632_v1  ;;  %v637_v1 = vadd.s32 (!%p1167_p11), 176, %v1921_v58 }
  0xa0   : > { %1224 = vmatmul.mubr.bf16.gmra.mrb[4].mxu0 %v1399_v15  ;;  %1240 = vmatmul.mubr.bf16.gmra.mrb[4].mxu1 %v1400_v16 }
  0xa1   : > { %1227 = vmatprep.mubr.bf16.mxu0 %v1401_v17  ;;  %1243 = vmatprep.mubr.bf16.mxu1 %v1402_v18  ;;  %v624_v17 = vadd.s32 (!%p1167_p11), 72, %v1921_v58  ;;  %v655_v18 = vadd.s32 (!%p1167_p11), %v1925_v60, %v622_v9 }
  0xa3   : > { %v657_v62 = vadd.s32 (!%p1167_p11), %v1925_v60, %v624_v17  ;;  %vm687_vm7 = vcmp.lt.s32.totalorder (!%p1167_p11), %v655_v18, 512 }
  0xa5   : > { %vm689_vm9 = vcmp.lt.s32.totalorder (!%p1167_p11), %v657_v62, 512 }
  0xa8   : > { %1228 = vmatmul.mubr.bf16.gmra.mrb[8].mxu0 %v1403_v19  ;;  %1244 = vmatmul.mubr.bf16.gmra.mrb[8].mxu1 %v1404_v20  ;;  %v625_v20 = vadd.s32 (!%p1167_p11), 80, %v1921_v58 }
  0xa9   : > { %1231 = vmatprep.mubr.bf16.mxu0 %v1405_v21  ;;  %1247 = vmatprep.mubr.bf16.mxu1 %v1406_v22  ;;  %v656_v21 = vadd.s32 (!%p1167_p11), %v1925_v60, %v623_v12 }
  0xaa   : > { %v658_v2 = vadd.s32 (!%p1167_p11), %v1925_v60, %v625_v20 }
  0xab   : > { %vm688_vm8 = vcmp.lt.s32.totalorder (!%p1167_p11), %v656_v21, 512 }
  0xac   : > { %vm690_vm10 = vcmp.lt.s32.totalorder (!%p1167_p11), %v658_v2, 512 }
  0xb0   : > { %1232 = vmatmul.mubr.bf16.gmra.mrb[12].mxu0 %v1407_v23  ;;  %1248 = vmatmul.mubr.bf16.gmra.mrb[12].mxu1 %v1408_v24 }
 0x16b   : > { %v1856_v25 = vpop.f32.mrb[0].mxu0  ;;  %v1858_v26 = vpop.f32.mrb[0].mxu1 }
 0x16c   : > { %v1860_v27 = vpop.f32.mrb[1].mxu0  ;;  %v1862_v28 = vpop.f32.mrb[1].mxu1  ;;  %v714_v13 = vsel (!%p1167_p11), %vm682_vm2, %v1856_v25, 0.0 }
 0x16d   : > { %v1864_v29 = vpop.f32.mrb[2].mxu0  ;;  %v1866_v30 = vpop.f32.mrb[2].mxu1  ;;  %v712_v7 = vsel (!%p1167_p11), %vm680_vm0, %v1860_v27, 0.0  ;;  %v787_v0 = vmul.f32 (!%p1167_p11), %v714_v13, %v714_v13 }
 0x16e   : > { %v1868_v31 = vpop.f32.mrb[3].mxu0  ;;  %v1870_v32 = vpop.f32.mrb[3].mxu1  ;;  %v715_v16 = vsel (!%p1167_p11), %vm683_vm3, %v1864_v29, 0.0  ;;  %v785_v24 = vmul.f32 (!%p1167_p11), %v712_v7, %v712_v7 }
 0x16f   : > { %v713_v8 = vsel (!%p1167_p11), %vm681_vm1, %v1868_v31, 0.0  ;;  %v788_v5 = vmul.f32 (!%p1167_p11), %v715_v16, %v715_v16  ;;  %vm697_vm1 = vcmp.lt.s32.totalorder (!%p1167_p11), %v665_v14, 512  ;;  %v670_v14 = vadd.s32 (!%p1167_p11), %v1925_v60, %v637_v1 }
 0x170   : > { %v745_v11 = vadd.f32 (!%p1167_p11), %v713_v8, %v712_v7  ;;  %v786_v57 = vmul.f32 (!%p1167_p11), %v713_v8, %v713_v8  ;;  %v628_v7 = vadd.s32 (!%p1167_p11), 104, %v1921_v58  ;;  %v659_v8 = vadd.s32 (!%p1167_p11), %v1925_v60, %v626_v59 }
 0x171   : > { %v642_v1 = vadd.s32 (!%p1167_p11), 216, %v1921_v58 }
 0x172   : > { %v746_v15 = vadd.f32 (!%p1167_p11), %v745_v11, %v714_v13  ;;  %v817_v6 = vadd.f32 (!%p1167_p11), %v786_v57, %v785_v24  ;;  %v629_v13 = vadd.s32 (!%p1167_p11), 112, %v1921_v58  ;;  %v661_v20 = vadd.s32 (!%p1167_p11), %v1925_v60, %v628_v7 }
 0x173   : > { %v1872_v33 = vpop.f32.mrb[4].mxu0  ;;  %v1874_v34 = vpop.f32.mrb[4].mxu1  ;;  %vm691_vm11 = vcmp.lt.s32.totalorder (!%p1167_p11), %v659_v8, 512  ;;  %v631_v57 = vadd.s32 (!%p1167_p11), 128, %v1921_v58  ;;  %v633_v7 = vadd.s32 (!%p1167_p11), 144, %v1921_v58 }
 0x174   : > { %v1876_v35 = vpop.f32.mrb[5].mxu0  ;;  %v1878_v36 = vpop.f32.mrb[5].mxu1  ;;  %v747_v19 = vadd.f32 (!%p1167_p11), %v746_v15, %v715_v16  ;;  %v718_v3 = vsel (!%p1167_p11), %vm686_vm6, %v1872_v33, 0.0  ;;  %v818_v12 = vadd.f32 (!%p1167_p11), %v817_v6, %v787_v0  ;;  %v662_v59 = vadd.s32 (!%p1167_p11), %v1925_v60, %v629_v13 }
 0x175   : > { %v1880_v37 = vpop.f32.mrb[6].mxu0  ;;  %v1882_v38 = vpop.f32.mrb[6].mxu1  ;;  %v716_v22 = vsel (!%p1167_p11), %vm684_vm4, %v1876_v35, 0.0  ;;  %vm693_vm13 = vcmp.lt.s32.totalorder (!%p1167_p11), %v661_v20, 512  ;;  %v664_v8 = vadd.s32 (!%p1167_p11), %v1925_v60, %v631_v57  ;;  %v634_v13 = vadd.s32 (!%p1167_p11), 152, %v1921_v58 }
 0x176   : > { %v1884_v39 = vpop.f32.mrb[7].mxu0  ;;  %v1886_v40 = vpop.f32.mrb[7].mxu1  ;;  %v748_v23 = vadd.f32 (!%p1167_p11), %v747_v19, %v716_v22  ;;  %v719_v9 = vsel (!%p1167_p11), %vm687_vm7, %v1880_v37, 0.0  ;;  %v789_v11 = vmul.f32 (!%p1167_p11), %v716_v22, %v716_v22  ;;  %v819_v18 = vadd.f32 (!%p1167_p11), %v818_v12, %v788_v5 }
 0x177   : > { %v717_v61 = vsel (!%p1167_p11), %vm685_vm5, %v1884_v39, 0.0  ;;  %v630_v19 = vadd.s32 (!%p1167_p11), 120, %v1921_v58  ;;  %v791_v22 = vmul.f32 (!%p1167_p11), %v718_v3, %v718_v3  ;;  %vm694_vm14 = vcmp.lt.s32.totalorder (!%p1167_p11), %v662_v59, 512 }
 0x178   : > { %v749_v63 = vadd.f32 (!%p1167_p11), %v748_v23, %v717_v61  ;;  %v790_v16 = vmul.f32 (!%p1167_p11), %v717_v61, %v717_v61  ;;  %v820_v24 = vadd.f32 (!%p1167_p11), %v819_v18, %v789_v11  ;;  %v792_v61 = vmul.f32 (!%p1167_p11), %v719_v9, %v719_v9 }
 0x179   : > { %v663_v2 = vadd.s32 (!%p1167_p11), %v1925_v60, %v630_v19  ;;  %v635_v19 = vadd.s32 (!%p1167_p11), 160, %v1921_v58  ;;  %v666_v20 = vadd.s32 (!%p1167_p11), %v1925_v60, %v633_v7  ;;  %vm696_vm0 = vcmp.lt.s32.totalorder (!%p1167_p11), %v664_v8, 512 }
 0x17a   : > { %v750_v4 = vadd.f32 (!%p1167_p11), %v749_v63, %v718_v3  ;;  %v821_v0 = vadd.f32 (!%p1167_p11), %v820_v24, %v790_v16  ;;  %v636_v57 = vadd.s32 (!%p1167_p11), 168, %v1921_v58  ;;  %v667_v59 = vadd.s32 (!%p1167_p11), %v1925_v60, %v634_v13 }
 0x17b   : > { %v1888_v41 = vpop.f32.mrb[8].mxu0  ;;  %v1890_v42 = vpop.f32.mrb[8].mxu1  ;;  %vm695_vm15 = vcmp.lt.s32.totalorder (!%p1167_p11), %v663_v2, 512  ;;  %v668_v2 = vadd.s32 (!%p1167_p11), %v1925_v60, %v635_v19  ;;  %vm698_vm2 = vcmp.lt.s32.totalorder (!%p1167_p11), %v666_v20, 512  ;;  %v638_v7 = vadd.s32 (!%p1167_p11), 184, %v1921_v58 }
 0x17c   : > { %v1892_v43 = vpop.f32.mrb[9].mxu0  ;;  %v1894_v44 = vpop.f32.mrb[9].mxu1  ;;  %v751_v10 = vadd.f32 (!%p1167_p11), %v750_v4, %v719_v9  ;;  %v722_v62 = vsel (!%p1167_p11), %vm690_vm10, %v1888_v41, 0.0  ;;  %v822_v6 = vadd.f32 (!%p1167_p11), %v821_v0, %v791_v22  ;;  %v669_v8 = vadd.s32 (!%p1167_p11), %v1925_v60, %v636_v57 }
 0x17d   : > { %v1896_v45 = vpop.f32.mrb[10].mxu0  ;;  %v1898_v46 = vpop.f32.mrb[10].mxu1  ;;  %v720_v15 = vsel (!%p1167_p11), %vm688_vm8, %v1892_v43, 0.0  ;;  %vm699_vm3 = vcmp.lt.s32.totalorder (!%p1167_p11), %v667_v59, 512  ;;  %v639_v13 = vadd.s32 (!%p1167_p11), 192, %v1921_v58  ;;  %vm700_vm4 = vcmp.lt.s32.totalorder (!%p1167_p11), %v668_v2, 512 }
 0x17e   : > { %v1900_v47 = vpop.f32.mrb[11].mxu0  ;;  %v1902_v48 = vpop.f32.mrb[11].mxu1  ;;  %v752_v17 = vadd.f32 (!%p1167_p11), %v751_v10, %v720_v15  ;;  %v723_v4 = vsel (!%p1167_p11), %vm691_vm11, %v1896_v45, 0.0  ;;  %v793_v3 = vmul.f32 (!%p1167_p11), %v720_v15, %v720_v15  ;;  %v823_v12 = vadd.f32 (!%p1167_p11), %v822_v6, %v792_v61 }
 0x17f   : > { %v721_v21 = vsel (!%p1167_p11), %vm689_vm9, %v1900_v47, 0.0  ;;  %v795_v15 = vmul.f32 (!%p1167_p11), %v722_v62, %v722_v62  ;;  %v640_v19 = vadd.s32 (!%p1167_p11), 200, %v1921_v58  ;;  %v671_v20 = vadd.s32 (!%p1167_p11), %v1925_v60, %v638_v7 }
 0x180   : > { %612 = sbr.rel (%p1167_p11) target bundleno = 448 (0x1c0), region = 52  ;;  %v753_v23 = vadd.f32 (!%p1167_p11), %v752_v17, %v721_v21  ;;  %v794_v9 = vmul.f32 (!%p1167_p11), %v721_v21, %v721_v21  ;;  %v824_v18 = vadd.f32 (!%p1167_p11), %v823_v12, %v793_v3  ;;  %v796_v21 = vmul.f32 (!%p1167_p11), %v723_v4, %v723_v4 }
 0x181   : > { %vm701_vm5 = vcmp.lt.s32.totalorder (!%p1167_p11), %v669_v8, 512  ;;  %v641_v57 = vadd.s32 (!%p1167_p11), 208, %v1921_v58  ;;  %v672_v59 = vadd.s32 (!%p1167_p11), %v1925_v60, %v639_v13  ;;  %vm702_vm6 = vcmp.lt.s32.totalorder (!%p1167_p11), %v670_v14, 512 }
 0x182   : > { %v754_v63 = vadd.f32 (!%p1167_p11), %v753_v23, %v722_v62  ;;  %v825_v24 = vadd.f32 (!%p1167_p11), %v824_v18, %v794_v9  ;;  %v673_v2 = vadd.s32 (!%p1167_p11), %v1925_v60, %v640_v19  ;;  %vm703_vm7 = vcmp.lt.s32.totalorder (!%p1167_p11), %v671_v20, 512 }
 0x183   : > { %v1904_v49 = vpop.f32.mrb[12].mxu0  ;;  %v1906_v50 = vpop.f32.mrb[12].mxu1  ;;  %v643_v7 = vadd.s32 (!%p1167_p11), 224, %v1921_v58  ;;  %v674_v8 = vadd.s32 (!%p1167_p11), %v1925_v60, %v641_v57  ;;  %vm704_vm8 = vcmp.lt.s32.totalorder (!%p1167_p11), %v672_v59, 512  ;;  %v644_v13 = vadd.s32 (!%p1167_p11), 232, %v1921_v58 }
 0x184   : > { %v1908_v51 = vpop.f32.mrb[13].mxu0  ;;  %v1910_v52 = vpop.f32.mrb[13].mxu1  ;;  %v755_v5 = vadd.f32 (!%p1167_p11), %v754_v63, %v723_v4  ;;  %v726_v23 = vsel (!%p1167_p11), %vm694_vm14, %v1904_v49, 0.0  ;;  %v826_v0 = vadd.f32 (!%p1167_p11), %v825_v24, %v795_v15  ;;  %v675_v14 = vadd.s32 (!%p1167_p11), %v1925_v60, %v642_v1 }
 0x185   : > { %v1912_v53 = vpop.f32.mrb[14].mxu0  ;;  %v1914_v54 = vpop.f32.mrb[14].mxu1  ;;  %v724_v10 = vsel (!%p1167_p11), %vm692_vm12, %v1908_v51, 0.0  ;;  %vm705_vm9 = vcmp.lt.s32.totalorder (!%p1167_p11), %v673_v2, 512  ;;  %v645_v19 = vadd.s32 (!%p1167_p11), 240, %v1921_v58  ;;  %v676_v20 = vadd.s32 (!%p1167_p11), %v1925_v60, %v643_v7 }
 0x186   : > { %v1916_v55 = vpop.f32.mrb[15].mxu0  ;;  %v1918_v56 = vpop.f32.mrb[15].mxu1  ;;  %v756_v11 = vadd.f32 (!%p1167_p11), %v755_v5, %v724_v10  ;;  %v727_v63 = vsel (!%p1167_p11), %vm695_vm15, %v1912_v53, 0.0  ;;  %v797_v62 = vmul.f32 (!%p1167_p11), %v724_v10, %v724_v10  ;;  %v728_v5 = vsel (!%p1167_p11), %vm696_vm0, %v1862_v28, 0.0 }
 0x187   : > { %v725_v17 = vsel %vm693_vm13, %v1916_v55, 0.0  ;;  %v827_v6 = vadd.f32 %v826_v0, %v796_v21  ;;  %v799_v10 = vmul.f32 %v726_v23, %v726_v23  ;;  %vm706_vm10 = vcmp.lt.s32.totalorder %v674_v8, 512 }
 0x188   : > { %v757_v16 = vadd.f32 %v756_v11, %v725_v17  ;;  %v798_v4 = vmul.f32 %v725_v17, %v725_v17  ;;  %v729_v11 = vsel %vm697_vm1, %v1870_v32, 0.0  ;;  %v800_v17 = vmul.f32 %v727_v63, %v727_v63 }
 0x189   : > { %v828_v12 = vadd.f32 %v827_v6, %v797_v62  ;;  %v646_v57 = vadd.s32 248, %v1921_v58  ;;  %v677_v59 = vadd.s32 %v1925_v60, %v644_v13  ;;  %vm707_vm11 = vcmp.lt.s32.totalorder %v675_v14, 512 }
 0x18a   : > { %v758_v22 = vadd.f32 %v757_v16, %v726_v23  ;;  %v730_v16 = vsel %vm698_vm2, %v1858_v26, 0.0  ;;  %v801_v23 = vmul.f32 %v728_v5, %v728_v5  ;;  %v678_v1 = vadd.s32 %v1925_v60, %v645_v19 }
 0x18b   : > { %v829_v18 = vadd.f32 %v828_v12, %v798_v4  ;;  %v738_v2 = vsel %vm706_vm10, %v1890_v42, 0.0  ;;  %vm708_vm12 = vcmp.lt.s32.totalorder %v676_v20, 512  ;;  %v739_v58 = vsel %vm707_vm11, %v1898_v46, 0.0 }
 0x18c   : > { %v759_v61 = vadd.f32 %v758_v22, %v727_v63  ;;  %v731_v22 = vsel %vm699_vm3, %v1866_v30, 0.0  ;;  %v802_v63 = vmul.f32 %v729_v11, %v729_v11  ;;  %vm709_vm13 = vcmp.lt.s32.totalorder %v677_v59, 512 }
 0x18d   : > { %v830_v24 = vadd.f32 %v829_v18, %v799_v10  ;;  %vm710_vm14 = vcmp.lt.s32.totalorder %v678_v1, 512  ;;  %v741_v14 = vsel %vm709_vm13, %v1918_v56, 0.0  ;;  %v812_v19 = vmul.f32 %v739_v58, %v739_v58 }
 0x18e   : > { %v760_v3 = vadd.f32 %v759_v61, %v728_v5  ;;  %v732_v61 = vsel %vm700_vm4, %v1878_v36, 0.0  ;;  %v803_v5 = vmul.f32 %v730_v16, %v730_v16  ;;  %v814_v59 = vmul.f32 %v741_v14, %v741_v14 }
 0x18f   : > { %v831_v0 = vadd.f32 %v830_v24, %v800_v17 }
 0x190   : > { %v761_v9 = vadd.f32 %v760_v3, %v729_v11  ;;  %v733_v3 = vsel %vm701_vm5, %v1886_v40, 0.0  ;;  %v804_v11 = vmul.f32 %v731_v22, %v731_v22 }
 0x191   : > { %v832_v6 = vadd.f32 %v831_v0, %v801_v23 }
 0x192   : > { %v762_v15 = vadd.f32 %v761_v9, %v730_v16  ;;  %v734_v9 = vsel %vm702_vm6, %v1874_v34, 0.0  ;;  %v805_v16 = vmul.f32 %v732_v61, %v732_v61 }
 0x193   : > { %v833_v12 = vadd.f32 %v832_v6, %v802_v63 }
 0x194   : > { %v763_v21 = vadd.f32 %v762_v15, %v731_v22  ;;  %v735_v15 = vsel %vm703_vm7, %v1882_v38, 0.0  ;;  %v806_v22 = vmul.f32 %v733_v3, %v733_v3 }
 0x195   : > { %v834_v18 = vadd.f32 %v833_v12, %v803_v5  ;;  %v808_v5 = vmul.f32 %v735_v15, %v735_v15 }
 0x196   : > { %v764_v62 = vadd.f32 %v763_v21, %v732_v61  ;;  %v736_v21 = vsel %vm704_vm8, %v1894_v44, 0.0  ;;  %v807_v61 = vmul.f32 %v734_v9, %v734_v9 }
 0x197   : > { %v835_v24 = vadd.f32 %v834_v18, %v804_v11  ;;  %v809_v8 = vmul.f32 %v736_v21, %v736_v21  ;;  %v740_v11 = vsel %vm708_vm12, %v1910_v52, 0.0 }
 0x198   : > { %v765_v4 = vadd.f32 %v764_v62, %v733_v3  ;;  %v737_v62 = vsel %vm705_vm9, %v1902_v48, 0.0  ;;  %v679_v3 = vadd.s32 %v1925_v60, %v646_v57  ;;  %v742_v60 = vsel %vm710_vm14, %v1906_v50, 0.0 }
 0x199   : > { %v836_v0 = vadd.f32 %v835_v24, %v805_v16  ;;  %v810_v12 = vmul.f32 %v737_v62, %v737_v62 }
 0x19a   : > { %v766_v10 = vadd.f32 %v765_v4, %v734_v9  ;;  %vm711_vm15 = vcmp.lt.s32.totalorder %v679_v3, 512 }
 0x19b   : > { %v837_v6 = vadd.f32 %v836_v0, %v806_v22  ;;  %v813_v22 = vmul.f32 %v740_v11, %v740_v11 }
 0x19c   : > { %v767_v17 = vadd.f32 %v766_v10, %v735_v15  ;;  %v811_v15 = vmul.f32 %v738_v2, %v738_v2 }
 0x19d   : > { %v838_v10 = vadd.f32 %v837_v6, %v807_v61  ;;  %v815_v61 = vmul.f32 %v742_v60, %v742_v60 }
 0x19e   : > { %v768_v23 = vadd.f32 %v767_v17, %v736_v21  ;;  %v743_v21 = vsel %vm711_vm15, %v1914_v54, 0.0 }
 0x19f   : > { %v839_v13 = vadd.f32 %v838_v10, %v808_v5 }
 0x1a0   : > { %v769_v63 = vadd.f32 %v768_v23, %v737_v62 }
 0x1a1   : > { %v840_v16 = vadd.f32 %v839_v13, %v809_v8 }
 0x1a2   : > { %v770_v4 = vadd.f32 %v769_v63, %v738_v2 }
 0x1a3   : > { %v841_v20 = vadd.f32 %v840_v16, %v810_v12 }
 0x1a4   : > { %v771_v7 = vadd.f32 %v770_v4, %v739_v58  ;;  %v816_v4 = vmul.f32 %v743_v21, %v743_v21  ;;  %v744_v58 = vld [vmem:[#allocation2] sm:$0x1] }
 0x1a5   : > { %v842_v24 = vadd.f32 %v841_v20, %v811_v15 }
 0x1a6   : > { %v772_v9 = vadd.f32 %v771_v7, %v740_v11 }
 0x1a7   : > { %v843_v62 = vadd.f32 %v842_v24, %v812_v19 }
 0x1a8   : > { %v773_v17 = vadd.f32 %v772_v9, %v741_v14 }
 0x1a9   : > { %v844_v0 = vadd.f32 %v843_v62, %v813_v22 }
 0x1aa   : > { %v774_v18 = vadd.f32 %v773_v17, %v742_v60  ;;  %v784_v17 = vld [vmem:[#allocation3] sm:$0x1] }
 0x1ab   : > { %v845_v2 = vadd.f32 %v844_v0, %v814_v59 }
 0x1ac   : > { %v775_v23 = vadd.f32 %v774_v18, %v743_v21 }
 0x1ad   : > { %v846_v6 = vadd.f32 %v845_v2, %v815_v61 }
 0x1ae   : > { %v776_v57 = vrot.slane %v775_v23, 4 }
 0x1af   : > { %v847_v7 = vadd.f32 %v846_v6, %v816_v4 }
 0x1b0   : > { %v777_v63 = vadd.f32 %v776_v57, %v775_v23 }
 0x1b1   : > { %v848_v10 = vrot.slane %v847_v7, 4 }
 0x1b2   : > { %v778_v1 = vrot.slane %v777_v63, 2 }
 0x1b3   : > { %v849_v12 = vadd.f32 %v848_v10, %v847_v7 }
 0x1b4   : > { %v779_v5 = vadd.f32 %v778_v1, %v777_v63 }
 0x1b5   : > { %v850_v11 = vrot.slane %v849_v12, 2 }
 0x1b6   : > { %v780_v3 = vrot.slane %v779_v5, 1 }
 0x1b7   : > { %v851_v13 = vadd.f32 %v850_v11, %v849_v12 }
 0x1b8   : > { %v781_v8 = vadd.f32 %v780_v3, %v779_v5 }
 0x1b9   : > { %v852_v14 = vrot.slane %v851_v13, 1 }
 0x1ba   : > { %v782_v9 = vadd.f32 %v781_v8, %v744_v58 }
 0x1bb   : > { %v853_v15 = vadd.f32 %v852_v14, %v851_v13 }
 0x1bc   : > { %783 = vst [vmem:[#allocation2] sm:$0x1] %v782_v9 }
 0x1bd   : > { %v854_v16 = vadd.f32 %v853_v15, %v784_v17 }
 0x1bf   : > { %855 = vst [vmem:[#allocation3] sm:$0x1] %v854_v16 }
 0x1c0 PF: > { %p856_p13 = scmp.eq.s32.totalorder %s1583_s22, 1 }
 0x1c2   : > { %p857_p0 = pnand %p856_p13, %p250_p7 }
 0x1c3   : > { %v861_v60 = vld [vmem:[#allocation2] sm:$0x1] (!%p857_p0) }
 0x1c4   : > { %860 = sbr.rel (%p857_p0) target bundleno = 481 (0x1e1), region = 56  ;;  %v862_v19 = vmul.f32 (!%p857_p0), 0.001953125, %v861_v60  ;;  %v868_v57 = vld [vmem:[%s2239_s2] sm:$0x1] (!%p857_p0) }
 0x1c5   : > { %v873_v63 = vld [vmem:[%s2240_s3] sm:$0x1] (!%p857_p0) }
 0x1c6   : > { %v863_v18 = vld [vmem:[#allocation3] sm:$0x1] (!%p857_p0)  ;;  %v865_v21 = vmul.f32 (!%p857_p0), %v862_v19, %v862_v19 }
 0x1c7   : > { %v864_v20 = vmul.f32 (!%p857_p0), 0.001953125, %v863_v18 }
 0x1c9   : > { %v866_v23 = vsub.f32 (!%p857_p0), %v864_v20, %v865_v21 }
 0x1cb   : > { %v867_v22 = vmax.f32 %v866_v23, 0.0 }
 0x1cd   : > { %v869_v24 = vadd.f32 1e-05, %v867_v22 }
 0x1cf   : > { %1409 = vrsqrt.f32 %v869_v24 }
 0x1d9   : > { %v1410_v59 = vpop.eup %1409 }
 0x1da   : > { %v871_v62 = vmul.f32 %v1410_v59, %v868_v57 }
 0x1dc   : > { %872 = vst [vmem:[#allocation4] sm:$0x1] %v871_v62  ;;  %v874_v61 = vmul.f32 %v871_v62, %v862_v19 }
 0x1de   : > { %v875_v0 = vsub.f32 %v873_v63, %v874_v61 }
 0x1e0   : > { %876 = vst [vmem:[#allocation5] sm:$0x1] %v875_v0 }
 0x1e1 PF: > { %p1169_p2 = scmp.ne.s32.totalorder %s1583_s22, 1 }
 0x1e3   : > { %879 = sbr.rel (%p1169_p2) target bundleno = 514 (0x202), region = 60  ;;  %v2032_v1 = vld [vmem:[#allocation4] ss:$0 sm:$0xff] (!%p1169_p2) }
 0x1e4   : > { %v887_v2 = vmul.f32 (!%p1169_p2), %v2032_v1, %v1860_v27  ;;  %v888_v5 = vmul.f32 (!%p1169_p2), %v2032_v1, %v1868_v31  ;;  %v889_v6 = vmul.f32 (!%p1169_p2), %v1856_v25, %v2032_v1  ;;  %v890_v3 = vmul.f32 (!%p1169_p2), %v1864_v29, %v2032_v1 }
 0x1e5   : > { %v891_v7 = vmul.f32 (!%p1169_p2), %v2032_v1, %v1876_v35  ;;  %v892_v58 = vmul.f32 (!%p1169_p2), %v2032_v1, %v1884_v39  ;;  %v893_v8 = vmul.f32 (!%p1169_p2), %v1872_v33, %v2032_v1  ;;  %v894_v27 = vmul.f32 (!%p1169_p2), %v1880_v37, %v2032_v1 }
 0x1e6   : > { %v895_v60 = vmul.f32 (!%p1169_p2), %v2032_v1, %v1892_v43  ;;  %v896_v18 = vmul.f32 (!%p1169_p2), %v2032_v1, %v1900_v47  ;;  %v897_v19 = vmul.f32 (!%p1169_p2), %v1888_v41, %v2032_v1  ;;  %v898_v20 = vmul.f32 (!%p1169_p2), %v1896_v45, %v2032_v1 }
 0x1e7   : > { %v2034_v4 = vld [vmem:[#allocation5] ss:$0 sm:$0xff] (!%p1169_p2)  ;;  %v899_v21 = vmul.f32 (!%p1169_p2), %v2032_v1, %v1908_v51  ;;  %v900_v23 = vmul.f32 (!%p1169_p2), %v2032_v1, %v1916_v55  ;;  %v901_v43 = vmul.f32 (!%p1169_p2), %v1904_v49, %v2032_v1  ;;  %v902_v47 = vmul.f32 (!%p1169_p2), %v1912_v53, %v2032_v1 }
 0x1e8   : > { %v926_v31 = vadd.f32 (!%p1169_p2), %v2034_v4, %v887_v2  ;;  %v927_v25 = vadd.f32 (!%p1169_p2), %v2034_v4, %v888_v5  ;;  %v928_v29 = vadd.f32 (!%p1169_p2), %v2034_v4, %v889_v6  ;;  %v929_v35 = vadd.f32 (!%p1169_p2), %v2034_v4, %v890_v3 }
 0x1e9   : > { %v930_v39 = vadd.f32 (!%p1169_p2), %v2034_v4, %v891_v7  ;;  %v931_v10 = vadd.f32 (!%p1169_p2), %v2034_v4, %v892_v58  ;;  %v932_v33 = vadd.f32 (!%p1169_p2), %v2034_v4, %v893_v8  ;;  %v933_v37 = vadd.f32 (!%p1169_p2), %v2034_v4, %v894_v27 }
 0x1ea   : > { %v958_v9 = vmax.f32 %v926_v31, 0.0  ;;  %v959_v12 = vmax.f32 %v927_v25, 0.0  ;;  %v960_v11 = vmax.f32 %v928_v29, 0.0  ;;  %v961_v13 = vmax.f32 %v929_v35, 0.0 }
 0x1eb   : > { %v962_v14 = vmax.f32 %v930_v39, 0.0  ;;  %v963_v17 = vmax.f32 %v931_v10, 0.0  ;;  %v964_v15 = vmax.f32 %v932_v33, 0.0  ;;  %v965_v16 = vmax.f32 %v933_v37, 0.0 }
 0x1ec   : > { %990 = vst [vmem:[%s1838_s30] sm:$0xff] %v958_v9  ;;  %991 = vst [vmem:[%s1838_s30 + $0x8] sm:$0xff] %v959_v12  ;;  %v934_v41 = vadd.f32 %v2034_v4, %v895_v60  ;;  %v935_v45 = vadd.f32 %v2034_v4, %v896_v18  ;;  %v936_v22 = vadd.f32 %v2034_v4, %v897_v19 }
 0x1ed   : > { %992 = vst [vmem:[%s1838_s30 + $0x10] sm:$0xff] %v960_v11  ;;  %993 = vst [vmem:[%s1838_s30 + $0x18] sm:$0xff] %v961_v13  ;;  %v937_v51 = vadd.f32 %v2034_v4, %v898_v20  ;;  %v938_v55 = vadd.f32 %v2034_v4, %v899_v21  ;;  %v939_v24 = vadd.f32 %v2034_v4, %v900_v23 }
 0x1ee   : > { %994 = vst [vmem:[%s1838_s30 + $0x20] sm:$0xff] %v962_v14  ;;  %995 = vst [vmem:[%s1838_s30 + $0x28] sm:$0xff] %v963_v17  ;;  %v940_v49 = vadd.f32 %v2034_v4, %v901_v43  ;;  %v941_v53 = vadd.f32 %v2034_v4, %v902_v47  ;;  %v966_v57 = vmax.f32 %v934_v41, 0.0  ;;  %v967_v59 = vmax.f32 %v935_v45, 0.0 }
 0x1ef   : > { %996 = vst [vmem:[%s1838_s30 + $0x30] sm:$0xff] %v964_v15  ;;  %997 = vst [vmem:[%s1838_s30 + $0x38] sm:$0xff] %v965_v16  ;;  %v968_v62 = vmax.f32 %v936_v22, 0.0  ;;  %v969_v63 = vmax.f32 %v937_v51, 0.0  ;;  %v970_v61 = vmax.f32 %v938_v55, 0.0  ;;  %v971_v0 = vmax.f32 %v939_v24, 0.0 }
 0x1f0   : > { %v972_v2 = vmax.f32 %v940_v49, 0.0  ;;  %v973_v5 = vmax.f32 %v941_v53, 0.0  ;;  %998 = vst [vmem:[%s1838_s30 + $0x40] sm:$0xff] %v966_v57  ;;  %999 = vst [vmem:[%s1838_s30 + $0x48] sm:$0xff] %v967_v59  ;;  %v903_v6 = vmul.f32 %v2032_v1, %v1862_v28  ;;  %v904_v3 = vmul.f32 %v2032_v1, %v1870_v32 }
 0x1f1   : > { %1000 = vst [vmem:[%s1838_s30 + $0x50] sm:$0xff] %v968_v62  ;;  %1001 = vst [vmem:[%s1838_s30 + $0x58] sm:$0xff] %v969_v63  ;;  %v905_v7 = vmul.f32 %v1858_v26, %v2032_v1  ;;  %v906_v58 = vmul.f32 %v1866_v30, %v2032_v1  ;;  %v907_v8 = vmul.f32 %v2032_v1, %v1878_v36 }
 0x1f2   : > { %1002 = vst [vmem:[%s1838_s30 + $0x60] sm:$0xff] %v970_v61  ;;  %1003 = vst [vmem:[%s1838_s30 + $0x68] sm:$0xff] %v971_v0  ;;  %v908_v27 = vmul.f32 %v2032_v1, %v1886_v40  ;;  %v909_v28 = vmul.f32 %v1874_v34, %v2032_v1  ;;  %v910_v32 = vmul.f32 %v1882_v38, %v2032_v1 }
 0x1f3   : > { %1004 = vst [vmem:[%s1838_s30 + $0x70] sm:$0xff] %v972_v2  ;;  %1005 = vst [vmem:[%s1838_s30 + $0x78] sm:$0xff] %v973_v5  ;;  %v942_v26 = vadd.f32 %v2034_v4, %v903_v6  ;;  %v943_v30 = vadd.f32 %v2034_v4, %v904_v3  ;;  %v944_v31 = vadd.f32 %v2034_v4, %v905_v7 }
 0x1f4   : > { %v945_v36 = vadd.f32 %v2034_v4, %v906_v58  ;;  %v946_v40 = vadd.f32 %v2034_v4, %v907_v8  ;;  %v947_v25 = vadd.f32 %v2034_v4, %v908_v27  ;;  %v948_v34 = vadd.f32 %v2034_v4, %v909_v28 }
 0x1f5   : > { %v949_v38 = vadd.f32 %v2034_v4, %v910_v32  ;;  %v974_v29 = vmax.f32 %v942_v26, 0.0  ;;  %v975_v35 = vmax.f32 %v943_v30, 0.0  ;;  %v976_v39 = vmax.f32 %v944_v31, 0.0 }
 0x1f6   : > { %v977_v10 = vmax.f32 %v945_v36, 0.0  ;;  %v978_v33 = vmax.f32 %v946_v40, 0.0  ;;  %v979_v37 = vmax.f32 %v947_v25, 0.0  ;;  %v980_v9 = vmax.f32 %v948_v34, 0.0 }
 0x1f7   : > { %v981_v12 = vmax.f32 %v949_v38, 0.0  ;;  %1006 = vst [vmem:[%s1838_s30 + $0x80] sm:$0xff] %v974_v29  ;;  %1007 = vst [vmem:[%s1838_s30 + $0x88] sm:$0xff] %v975_v35  ;;  %v911_v11 = vmul.f32 %v2032_v1, %v1894_v44  ;;  %v912_v13 = vmul.f32 %v2032_v1, %v1902_v48  ;;  %v913_v14 = vmul.f32 %v1890_v42, %v2032_v1 }
 0x1f8   : > { %1008 = vst [vmem:[%s1838_s30 + $0x90] sm:$0xff] %v976_v39  ;;  %1009 = vst [vmem:[%s1838_s30 + $0x98] sm:$0xff] %v977_v10  ;;  %v914_v17 = vmul.f32 %v1898_v46, %v2032_v1  ;;  %v915_v15 = vmul.f32 %v2032_v1, %v1910_v52  ;;  %v916_v16 = vmul.f32 %v2032_v1, %v1918_v56 }
 0x1f9   : > { %1010 = vst [vmem:[%s1838_s30 + $0xa0] sm:$0xff] %v978_v33  ;;  %1011 = vst [vmem:[%s1838_s30 + $0xa8] sm:$0xff] %v979_v37  ;;  %v917_v44 = vmul.f32 %v1906_v50, %v2032_v1  ;;  %v918_v48 = vmul.f32 %v1914_v54, %v2032_v1  ;;  %v950_v42 = vadd.f32 %v2034_v4, %v911_v11 }
 0x1fa   : > { %1012 = vst [vmem:[%s1838_s30 + $0xb0] sm:$0xff] %v980_v9  ;;  %1013 = vst [vmem:[%s1838_s30 + $0xb8] sm:$0xff] %v981_v12  ;;  %v951_v46 = vadd.f32 %v2034_v4, %v912_v13  ;;  %v952_v60 = vadd.f32 %v2034_v4, %v913_v14  ;;  %v953_v52 = vadd.f32 %v2034_v4, %v914_v17 }
 0x1fb   : > { %v954_v56 = vadd.f32 %v2034_v4, %v915_v15  ;;  %v955_v50 = vadd.f32 %v2034_v4, %v916_v16  ;;  %v956_v54 = vadd.f32 %v2034_v4, %v917_v44  ;;  %v957_v1 = vadd.f32 %v2034_v4, %v918_v48 }
 0x1fc   : > { %v982_v18 = vmax.f32 %v950_v42, 0.0  ;;  %v983_v19 = vmax.f32 %v951_v46, 0.0  ;;  %v984_v20 = vmax.f32 %v952_v60, 0.0  ;;  %v985_v21 = vmax.f32 %v953_v52, 0.0 }
 0x1fd   : > { %v986_v23 = vmax.f32 %v954_v56, 0.0  ;;  %v987_v43 = vmax.f32 %v955_v50, 0.0  ;;  %v988_v47 = vmax.f32 %v956_v54, 0.0  ;;  %v989_v41 = vmax.f32 %v957_v1, 0.0 }
 0x1fe   : > { %1014 = vst [vmem:[%s1838_s30 + $0xc0] sm:$0xff] %v982_v18  ;;  %1015 = vst [vmem:[%s1838_s30 + $0xc8] sm:$0xff] %v983_v19 }
 0x1ff   : > { %1016 = vst [vmem:[%s1838_s30 + $0xd0] sm:$0xff] %v984_v20  ;;  %1017 = vst [vmem:[%s1838_s30 + $0xd8] sm:$0xff] %v985_v21 }
 0x200   : > { %1018 = vst [vmem:[%s1838_s30 + $0xe0] sm:$0xff] %v986_v23  ;;  %1019 = vst [vmem:[%s1838_s30 + $0xe8] sm:$0xff] %v987_v43 }
 0x201   : > { %1020 = vst [vmem:[%s1838_s30 + $0xf0] sm:$0xff] %v988_v47  ;;  %1021 = vst [vmem:[%s1838_s30 + $0xf8] sm:$0xff] %v989_v41 }
 0x202 PF: > { %s1030_s14 = smul.u32 %s1579_s21, %s1583_s22  ;;  %s1037_s10 = sshll.u32 %s1838_s30, 4  ;;  %s2167_s10 = int_to_ptr.vmem [resolvable:$true] %s1037_s10 }
 0x203   : > { %s2277_s4 = sld [smem:[#allocation21_spill]]  ;;  %s2176_s9 = scalar_lea.sflag [#allocation8], %s242_s15 }
 0x204   : > { %s1178_s27 = sshll.u32 %s1030_s14, 12  ;;  %s1469_s8 = scalar_lea.vmem %s2167_s10, 4096 }
 0x205   : > { %p1470_p5 = scmp.ne.s32.totalorder %s2167_s10, %s1469_s8  ;;  %p2278_p8 = scmp.ne.s32.totalorder %s2261_s5, 0 }
 0x206   : > { %s1602_s21 = smov [#allocation11]  }
 0x207   : > { %p1471_p12 = pnand %p1470_p5, %p2278_p8  ;;  %s1473_s22 = sshll.u32 %s1602_s21, 4  ;;  %s1474_s22 = int_to_ptr.vmem [resolvable:$false] %s1473_s22 }
 0x208   : > { %s1475_s7 = scalar_lea.vmem %s1474_s22, 8192  ;;  %p1476_p6 = scmp.lt.s32.totalorder %s2167_s10, %s1474_s22 }
 0x209   : > { %s2172_s12 = scalar_lea.hbm %s2277_s4, %s1178_s27  ;;  %p1472_p1 = pneg %p1471_p12 }
 0x20a   : > { %p1477_p10 = scmp.lt.s32.totalorder %s1475_s7, %s1469_s8 }
 0x20c   : > { %p1478_p3 = por %p1477_p10, %p1476_p6 }
 0x20e   : > { %p1479_p4 = pnand %p1478_p3, %p1472_p1 }
 0x210   : > { %1482 = shalt.err (!%p1479_p4)
}
 0x211   : > { %s1483_s15 = scalar_lea.hbm %s2172_s12, 4096  ;;  %s1487_s18 = scalar_lea.hbm %s2277_s4, 8192 }
 0x212   : > { %p1484_p7 = scmp.ne.s32.totalorder %s2172_s12, %s1483_s15  ;;  %p1488_p13 = scmp.lt.u32.totalorder %s2172_s12, %s2277_s4 }
 0x213   : > { %p1489_p0 = scmp.lt.u32.totalorder %s1487_s18, %s1483_s15  ;;  %p1491_p5 = scmp.lt.u32.totalorder %s1483_s15, %s2172_s12 }
 0x214   : > { %p1485_p9 = pnand %p1484_p7, %p2278_p8 }
 0x215   : > { %p1490_p2 = por %p1489_p0, %p1488_p13 }
 0x216   : > { %p1486_p11 = pneg %p1485_p9 }
 0x217   : > { %p1492_p12 = por %p1491_p5, %p1490_p2 }
 0x219   : > { %p1493_p1 = pnand %p1492_p12, %p1486_p11 }
 0x21b   : > { %1496 = shalt.err (!%p1493_p1)
}
 0x21c   : > { %s1603_s11 = smov 128   ;;  %s1604_s14 = smov 8  }
 0x21d   : > { %1273 = dma.vmem_to_hbm [thread:$0]  (%p2278_p8), %s2167_s10, 4096, %s2172_s12, %s2176_s9, %s1603_s11, %s1603_s11, %s1604_s14  }
 0x21e PF: > { %s2279_s27 = sld [smem:[#allocation15_spill]]  ;;  %s2280_s6 = sld [smem:[#allocation17_spill]] }
 0x21f   : > { %p1290_p6 = scmp.ge.s32.totalorder %s1595_s25, 2 }
 0x224   : > { %s1052_s1 = sand.u32 1, %s2279_s27   ;;  %p2281_p10 = scmp.ne.s32.totalorder %s2280_s6, 0 }
 0x225   : > { %s1053_s8 = scalar_lea.sflag [#allocation8], %s1052_s1 }
 0x226   : > { %p1284_p3 = pnand %p1290_p6, %p2281_p10 }
 0x228   : > { %1550 = dma.done.wait (!%p1284_p3), %s1053_s8, 4096  }
 0x229   : > { %1552 = vsyncadd (!%p1284_p3), %s1053_s8, 4294963200  ;;  %s21_s25 = sadd.s32 1, %s1595_s25   ;;  %s2282_s22 = sld [smem:[#allocation16_spill]] }
 0x22a   : > { %p18_p4 = scmp.ge.s32.totalorder %s21_s25, 6   ;;  %s2283_s5 = sld [smem:[#allocation18_spill]] }
 0x22b   : > { %s2284_s10 = sld [smem:[#allocation19_spill]]  ;;  %s2285_s15 = smov %s1559_s16 }
 0x22c   : > { %s2286_s16 = smov %s1563_s17  ;;  %s2287_s17 = smov %s1777_s24 }
 0x22d   : > { %s2288_s18 = smov %s1571_s19  ;;  %s2289_s19 = smov %s1575_s20 }
 0x22e   : > { %s2290_s20 = smov %s1762_s13  ;;  %s2291_s21 = smov %s1587_s23 }
 0x22f   :  { %20 = sbr.rel (!%p18_p4) target bundleno = 13 (0xd), region = 101 }
 0x230   : > { %s2292_s23 = smov %s2283_s5 }
 0x231   : > { %s2293_s24 = smov %s2284_s10 }
 0x236   :  { %1058 = vsyncpa [#allocation7], 1 }
 0x237   :  { %1060 = vsyncpa [#allocation7 + $0x1], 1 }
 0x238   :  { %1061 = vsyncpa [#allocation10], 1 }
 0x239   :  { %1062 = vsyncpa [#allocation8], 1 }
 0x23a   :  { %1064 = vsyncpa [#allocation8 + $0x1], 1 }

</bundles_post_ra>
